<compile_context>
chip_gen: v7x
topology: tpu7x:2x2x1
jax: 0.10.0
libtpu: 0.0.40
codegen_flags: <defaults>
</compile_context>

<pallas_src>
import functools

import jax
import jax.numpy as jnp
from jax import lax
from jax.experimental import pallas as pl
from jax.experimental.pallas import tpu as pltpu

POOLER_TYPES = [
    'cls', 'avg', 'last_second_hidden', 'avg_all_hidden',
    'avg_second_to_last_hidden', 'avg_first_last', 'avg_last2', 'avg_last4',
    'max_all_hidden', 'max_second_to_last_hidden', 'max_first_last',
    'max_last2', 'max_last4', 'concat_last4',
]

_MIB = 1024 * 1024
_FORCE_VMEM_BUDGET = None   # test hook: override the per-step VMEM budget


def _vmem_config():
    """Return (per-step working-set budget, scoped vmem limit) in bytes."""
    cap = None
    try:
        cap = getattr(pltpu.get_tpu_info(), "vmem_capacity_bytes", None)
    except Exception:
        cap = None
    if not cap:
        cap = 64 * _MIB                       # assume the smallest (v7x)
    if cap >= 100 * _MIB:                     # v5e / v6e: 128 MiB physical VMEM
        budget, limit = 64 * _MIB, 100 * _MIB
    else:                                     # v7x: 64 MiB physical VMEM
        budget, limit = 24 * _MIB, 48 * _MIB
    if _FORCE_VMEM_BUDGET is not None:
        budget = _FORCE_VMEM_BUDGET
    return budget, limit


# ------------------------------ kernels -------------------------------------


def _pool_kernel(*refs, num_layers, combine):
    """Fused layer-combine + masked-sum over the sequence, grid (B, H, S).

    refs = (mask_ref, layer_ref_0..layer_ref_{L-1}, out_ref, acc_ref, den_ref)
      mask_ref : (tb, 1, ts)      f32
      layer_*  : (tb, ts, th)     native dtype
      out_ref  : (tb, n_out, th)  native dtype  (n_out = L for concat else 1)
      acc_ref  : (tb, n_out, th)  f32 VMEM scratch
      den_ref  : (tb, 1)          f32 VMEM scratch
    """
    mask_ref = refs[0]
    layer_refs = refs[1:1 + num_layers]
    out_ref, acc_ref, den_ref = refs[1 + num_layers:]

    s_idx = pl.program_id(2)

    @pl.when(s_idx == 0)
    def _init():
        acc_ref[...] = jnp.zeros_like(acc_ref)
        den_ref[...] = jnp.zeros_like(den_ref)

    mask = mask_ref[...]                                   # (tb, 1, ts) f32

    def masked_sum(x):
        # Batched (1, ts) @ (ts, th) contraction on the MXU -> (tb, 1, th) f32
        return lax.dot_general(
            mask, x,
            dimension_numbers=(((2,), (1,)), ((0,), (0,))),
            preferred_element_type=jnp.float32)

    if combine == "concat":
        # masked-pool(concat(h_l)) == concat(masked-pool(h_l)); accumulate
        # each layer straight into its slice of the accumulator.
        for l, r in enumerate(layer_refs):
            acc_ref[:, l:l + 1, :] += masked_sum(r[...].astype(jnp.float32))
    elif combine == "max":
        h = layer_refs[0][...].astype(jnp.float32)
        for r in layer_refs[1:]:
            h = jnp.maximum(h, r[...].astype(jnp.float32))
        acc_ref[...] += masked_sum(h)
    else:  # "mean": per-layer masked sums; 1/L is folded into the finalize.
        total = None
        for r in layer_refs:
            s = masked_sum(r[...].astype(jnp.float32))
            total = s if total is None else total + s
        acc_ref[...] += total

    den_ref[...] += jnp.sum(mask, axis=-1)                 # (tb, 1)

    @pl.when(s_idx == pl.num_programs(2) - 1)
    def _finalize():
        den = den_ref[...]                                 # (tb, 1)
        if combine == "mean" and num_layers > 1:
            den = den * float(num_layers)
        # Division-by-zero for an all-zero mask row mirrors the PyTorch module.
        out_ref[...] = (acc_ref[...] / den[:, :, None]).astype(out_ref.dtype)


def _cls_kernel(last_ref, out_ref):
    """out = last_hidden[:, 0, :] (only a tiny token-0 slab is DMA'd)."""
    out_ref[...] = last_ref[:, 0, :]


# ------------------------------ tiling --------------------------------------


def _pick_tile(dim, target, align):
    """Largest `align`-multiple divisor of dim that is <= target, or dim
    itself if dim <= target.  Returns 0 if no such divisor exists."""
    if dim <= target:
        return dim
    t = (target // align) * align
    while t >= align:
        if dim % t == 0:
            return t
        t -= align
    return 0


def _choose_tiles(B, S, H, L, itemsize, concat, budget):
    n_out = L if concat else 1
    tb = _pick_tile(B, 8, 1) or B

    def step_bytes(ts, th):
        layer = L * 2 * tb * ts * th * itemsize            # dbl-buffered inputs
        mask = 2 * tb * 8 * max(ts, 128) * 4               # dbl-buffered mask tile
        outb = 2 * tb * max(n_out, 8) * th * itemsize      # dbl-buffered output
        acc = tb * max(n_out, 8) * th * 4 + tb * 8 * 128 * 4
        tmp = 2 * tb * ts * th * 4                         # f32 cast / max temps
        return layer + mask + outb + acc + tmp

    # Shrink the H block (keeping multiples of 128) until the smallest useful
    # S tile fits the budget.
    th = H
    while th % 256 == 0 and step_bytes(min(S, 128), th) > budget:
        th //= 2
    # Give the second TensorCore (v7x) an independent output slab when the
    # batch alone provides fewer than 2 parallel blocks.
    while th % 256 == 0 and (B // tb) * (H // th) < 2:
        th //= 2

    # Whole sequence as one block if it fits (full-dim blocks need no
    # lane alignment).
    if step_bytes(S, th) <= budget:
        return tb, S, th, S

    # Tile the sequence: ts must be a multiple of 128 (lane dim of the mask
    # block).  Prefer a divisor of S; otherwise pad S up to a multiple of ts.
    cap = 128
    while cap * 2 < S and step_bytes(cap * 2, th) <= budget:
        cap *= 2
    ts = _pick_tile(S, cap, 128)
    if ts:
        return tb, ts, th, S
    s_pad = ((S + cap - 1) // cap) * cap
    return tb, cap, th, s_pad


# ------------------------------ wrappers ------------------------------------


def _masked_pool(selected_layers, attention_mask, combine):
    """selected_layers: list of (B, S, H) arrays; returns (B, H) or (B, L*H)."""
    layers = list(selected_layers)
    L = len(layers)
    B, S, H = layers[0].shape
    dtype = layers[0].dtype
    n_out = L if combine == "concat" else 1

    budget, vmem_limit = _vmem_config()
    tb, ts, th, s_pad = _choose_tiles(
        B, S, H, L, jnp.dtype(dtype).itemsize, combine == "concat", budget)

    mask = attention_mask.astype(jnp.float32).reshape(B, 1, S)
    if s_pad != S:
        pad = s_pad - S
        # Zero padding is exact: padded positions add 0 to both num and den.
        mask = jnp.pad(mask, ((0, 0), (0, 0), (0, pad)))
        layers = [jnp.pad(x, ((0, 0), (0, pad), (0, 0))) for x in layers]

    grid = (B // tb, H // th, s_pad // ts)

    mask_spec = pl.BlockSpec((tb, 1, ts), lambda i, h, j: (i, 0, j))
    layer_spec = pl.BlockSpec((tb, ts, th), lambda i, h, j: (i, j, h))
    out_spec = pl.BlockSpec((tb, n_out, th), lambda i, h, j: (i, 0, h))

    kernel = functools.partial(_pool_kernel, num_layers=L, combine=combine)

    out = pl.pallas_call(
        kernel,
        out_shape=jax.ShapeDtypeStruct((B, n_out, H), dtype),
        grid_spec=pltpu.PrefetchScalarGridSpec(
            num_scalar_prefetch=0,
            grid=grid,
            in_specs=[mask_spec] + [layer_spec] * L,
            out_specs=out_spec,
            scratch_shapes=[
                pltpu.VMEM((tb, n_out, th), jnp.float32),
                pltpu.VMEM((tb, 1), jnp.float32),
            ],
        ),
        compiler_params=pltpu.CompilerParams(
            dimension_semantics=("parallel", "parallel", "arbitrary"),
            vmem_limit_bytes=vmem_limit,
        ),
    )(mask, *layers)
    # (B, n_out, H) -> (B, n_out*H): for concat this is exactly torch.cat(dim=2)
    # of the per-layer pooled vectors; for the others n_out == 1.
    return out.reshape(B, n_out * H)


def _cls_pool(last_hidden):
    B, S, H = last_hidden.shape
    itemsize = jnp.dtype(last_hidden.dtype).itemsize
    sub_align = max(8, 32 // itemsize)            # sublane packing (16 for bf16)
    tb = _pick_tile(B, 8, 8) or B                 # out block sublane dim
    ts = S if S <= sub_align else sub_align       # smallest slab containing token 0
    grid = (B // tb,)
    return pl.pallas_call(
        _cls_kernel,
        out_shape=jax.ShapeDtypeStruct((B, H), last_hidden.dtype),
        grid_spec=pltpu.PrefetchScalarGridSpec(
            num_scalar_prefetch=0,
            grid=grid,
            in_specs=[pl.BlockSpec((tb, ts, H), lambda i: (i, 0, 0))],
            out_specs=pl.BlockSpec((tb, H), lambda i: (i, 0)),
        ),
        compiler_params=pltpu.CompilerParams(
            dimension_semantics=("parallel",)),
    )(last_hidden)


def pooler_forward(pooler_type, attention_mask, last_hidden_state, hidden_states):
    """Mirror of Pooler.forward. hidden_states: tuple of (B, S, H) arrays,
    hidden_states[-1] == last_hidden_state (HF convention)."""
    if pooler_type not in POOLER_TYPES:
        raise NotImplementedError(pooler_type)

    hs = list(hidden_states)

    if pooler_type == 'cls':
        return _cls_pool(last_hidden_state)
    elif pooler_type == 'avg':
        return _masked_pool([last_hidden_state], attention_mask, "mean")
    elif pooler_type == 'last_second_hidden':
        return _masked_pool([hs[-2]], attention_mask, "mean")
    elif pooler_type == 'avg_all_hidden':
        return _masked_pool(hs, attention_mask, "mean")
    elif pooler_type == 'avg_second_to_last_hidden':
        return _masked_pool(hs[1:], attention_mask, "mean")
    elif pooler_type == 'avg_first_last':
        return _masked_pool([hs[0], hs[-1]], attention_mask, "mean")
    elif pooler_type == 'avg_last2':
        return _masked_pool(hs[-2:], attention_mask, "mean")
    elif pooler_type == 'avg_last4':
        return _masked_pool(hs[-4:], attention_mask, "mean")
    elif pooler_type == 'max_all_hidden':
        return _masked_pool(hs, attention_mask, "max")
    elif pooler_type == 'max_second_to_last_hidden':
        return _masked_pool(hs[1:], attention_mask, "max")
    elif pooler_type == 'max_first_last':
        return _masked_pool([hs[0], hs[-1]], attention_mask, "max")
    elif pooler_type == 'max_last2':
        return _masked_pool(hs[-2:], attention_mask, "max")
    elif pooler_type == 'max_last4':
        return _masked_pool(hs[-4:], attention_mask, "max")
    elif pooler_type == 'concat_last4':
        return _masked_pool(hs[-4:], attention_mask, "concat")
    else:
        raise NotImplementedError(pooler_type)


# --------------------------- pure-JAX reference ------------------------------


def _ref_masked(layers, mask, combine):
    stacked = jnp.stack(layers, axis=0)
    h = jnp.mean(stacked, axis=0) if combine == "mean" else jnp.max(stacked, axis=0)
    num = jnp.sum(h * mask[:, :, None], axis=1)
    den = jnp.sum(mask, axis=-1)[:, None]
    return num / den


def pooler_reference(pooler_type, mask, last, hs):
    hs = list(hs)
    if pooler_type == 'cls':
        return last[:, 0]
    if pooler_type == 'avg':
        return _ref_masked([last], mask, "mean")
    if pooler_type == 'last_second_hidden':
        return _ref_masked([hs[-2]], mask, "mean")
    if pooler_type == 'avg_all_hidden':
        return _ref_masked(hs, mask, "mean")
    if pooler_type == 'avg_second_to_last_hidden':
        return _ref_masked(hs[1:], mask, "mean")
    if pooler_type == 'avg_first_last':
        return _ref_masked([hs[0], hs[-1]], mask, "mean")
    if pooler_type == 'avg_last2':
        return _ref_masked(hs[-2:], mask, "mean")
    if pooler_type == 'avg_last4':
        return _ref_masked(hs[-4:], mask, "mean")
    if pooler_type == 'max_all_hidden':
        return _ref_masked(hs, mask, "max")
    if pooler_type == 'max_second_to_last_hidden':
        return _ref_masked(hs[1:], mask, "max")
    if pooler_type == 'max_first_last':
        return _ref_masked([hs[0], hs[-1]], mask, "max")
    if pooler_type == 'max_last2':
        return _ref_masked(hs[-2:], mask, "max")
    if pooler_type == 'max_last4':
        return _ref_masked(hs[-4:], mask, "max")
    if pooler_type == 'concat_last4':
        cat = jnp.concatenate(hs[-4:], axis=2)
        num = jnp.sum(cat * mask[:, :, None], axis=1)
        den = jnp.sum(mask, axis=-1)[:, None]
        return num / den
    raise NotImplementedError(pooler_type)


# ---------------------------------- main -------------------------------------


def _make_inputs(key, B, S, H, num_hidden, lengths):
    keys = jax.random.split(key, num_hidden)
    hidden_states = tuple(
        jax.random.normal(k, (B, S, H), dtype=jnp.float32) for k in keys)
    last_hidden_state = hidden_states[-1]
    attention_mask = (
        jnp.arange(S, dtype=jnp.int32)[None, :] < lengths[:, None]
    ).astype(jnp.float32)
    return attention_mask, last_hidden_state, hidden_states


def _check(ptypes, attention_mask, last, hs, atol, rtol):
    ok = True
    for ptype in ptypes:
        out = pooler_forward(ptype, attention_mask, last, hs)
        out = jax.block_until_ready(out)
        ref = pooler_reference(ptype, attention_mask, last, hs)
        if out.shape != ref.shape or not jnp.allclose(out, ref, atol=atol, rtol=rtol):
            ok = False
            print(f"MISMATCH for pooler_type={ptype}")
    return ok


if __name__ == "__main__":
    key = jax.random.PRNGKey(0)

    # Config 1: small shapes, single-block path, all pooler types.
    B, S, H = 2, 8, 32
    NUM_HIDDEN = 5   # embeddings + 4 layers; hidden_states[-1] == last_hidden_state
    mask1, last1, hs1 = _make_inputs(
        key, B, S, H, NUM_HIDDEN, jnp.array([6, 8], dtype=jnp.int32))
    ok = _check(POOLER_TYPES, mask1, last1, hs1, atol=2e-5, rtol=2e-5)

    # Config 2: forces the sequence-tiled (multi-step reduction) path, the
    # H-split parallel axis, and the S-padding path by shrinking the budget.
    _FORCE_VMEM_BUDGET = 256 * 1024
    B2, S2, H2 = 2, 200, 512
    key2 = jax.random.PRNGKey(1)
    mask2, last2, hs2 = _make_inputs(
        key2, B2, S2, H2, NUM_HIDDEN, jnp.array([131, 200], dtype=jnp.int32))
    ok &= _check(['cls', 'avg', 'avg_all_hidden', 'max_last4', 'concat_last4'],
                 mask2, last2, hs2, atol=2e-5, rtol=2e-5)
    _FORCE_VMEM_BUDGET = None

    if ok:
        print("KERNEL_OK")
</pallas_src>

<mosaic_0001>
module attributes {stable_mosaic.version = 11 : i64} {
  func.func @_cls_kernel(%arg0: i32, %arg1: memref<2x8x32xf32, #tpu.memory_space<vmem>>, %arg2: memref<2x32xf32, #tpu.memory_space<vmem>>) attributes {dimension_semantics = [#tpu.dimension_semantics<parallel>], iteration_bounds = array<i64: 1>, scalar_prefetch = 0 : i64, scratch_operands = 0 : i64, tpu.core_type = #tpu.core_type<tc>, window_params = [{transform_indices = @transform_0, window_bounds = array<i64: 2, 8, 32>}, {transform_indices = @transform_1, window_bounds = array<i64: 2, 32>}]} {
    %c0 = arith.constant 0 : index
    %c0_0 = arith.constant 0 : index
    %c0_1 = arith.constant 0 : index
    %0 = vector.load %arg1[%c0, %c0_0, %c0_1] : memref<2x8x32xf32, #tpu.memory_space<vmem>>, vector<2x1x32xf32>
    %1 = vector.shape_cast %0 : vector<2x1x32xf32> to vector<2x32xf32>
    %c0_2 = arith.constant 0 : index
    %c0_3 = arith.constant 0 : index
    %2 = vector.load %arg2[%c0_2, %c0_3] : memref<2x32xf32, #tpu.memory_space<vmem>>, vector<2x32xf32>
    tpu.vector_store %arg2[%c0_2, %c0_3], %1 {strides = array<i32>} : memref<2x32xf32, #tpu.memory_space<vmem>>, vector<2x32xf32>,
    return
  }
  func.func @transform_0(%arg0: i32) -> (i32, i32, i32) {
    %c0_i32 = arith.constant 0 : i32
    %c0_i32_0 = arith.constant 0 : i32
    %c0_i32_1 = arith.constant 0 : i32
    return %arg0, %c0_i32, %c0_i32_0 : i32, i32, i32
  }
  func.func @transform_1(%arg0: i32) -> (i32, i32) {
    %c0_i32 = arith.constant 0 : i32
    %c0_i32_0 = arith.constant 0 : i32
    return %arg0, %c0_i32 : i32, i32
  }
}

</mosaic_0001>

<bundles_post_ra>
// kernel: tpu_custom_call.1
= control target key start
LH: loop header
LB: loop body
LE: loop exit
PB: predicated region body
PF: predicated region fallthrough
CT: control target
= control target key end

     0   :  { %6 = vsyncpa [#allocation3], 0  ;;  %s138_s0 = inlined_call_operand.hbm [shape: f32[2,8,32], index: 0, kind: input, shape index: {}]   ;;  %s139_s1 = inlined_call_operand.hbm [shape: f32[2,32], index: 1, kind: output, shape index: {}]  }
   0x1   :  { %7 = vsyncpa [#allocation4], 0  ;;  %s100_s6 = smov [#allocation2]   ;;  %s52_s10 = scalar_lea.hbm %s138_s0, 256 }
   0x2   :  { %s13_s7 = sshll.u32 %s100_s6, 4  ;;  %p53_p0 = scmp.ne.s32.totalorder %s138_s0, %s52_s10  ;;  %s14_s7 = int_to_ptr.vmem [resolvable:$true] %s13_s7 }
   0x3   :  { %p56_p1 = scmp.lt.u32.totalorder %s52_s10, %s138_s0 }
   0x5   :  { %p58_p2 = pnand %p56_p1, %p53_p0 }
   0x7   :  { %61 = shalt.err (!%p58_p2)
}
   0x8   :  { %s62_s15 = scalar_lea.vmem %s14_s7, 256  ;;  %p67_p4 = scmp.lt.s32.totalorder %s14_s7, %s14_s7 }
   0x9   :  { %p63_p3 = scmp.ne.s32.totalorder %s14_s7, %s62_s15  ;;  %p68_p5 = scmp.lt.s32.totalorder %s62_s15, %s62_s15 }
   0xb   :  { %p69_p6 = por %p68_p5, %p67_p4 }
   0xd   :  { %p70_p7 = pnand %p69_p6, %p63_p3 }
   0xf   :  { %73 = shalt.err (!%p70_p7)
}
  0x10   :  { %s101_s16 = smov 128   ;;  %s102_s17 = smov 8  }
  0x11   :  { %19 = dma.hbm_to_vmem [thread:$0]  %s138_s0, 256, %s14_s7, [#allocation3], %s101_s16, %s101_s16, %s102_s17  }
  0x12   :  { %96 = dma.done.wait [#allocation3], 256  }
  0x13   :  { %97 = vsyncadd [#allocation3], 4294967040  ;;  %s103_s20 = smov [#allocation5]   ;;  %v23_v0 = vld [vmem:[#allocation2] sm:$0x1]  ;;  %vm28_vm0 = vcmask 1041409  }
  0x14   :  { %s39_s21 = sshll.u32 %s103_s20, 4  ;;  %v24_v1 = vld [vmem:[#allocation2 + $0x8] sm:$0x1]  ;;  %vm31_vm1 = vcmask 254976   ;;  %s40_s21 = int_to_ptr.vmem [resolvable:$true] %s39_s21 }
  0x15   :  { %v27_v2 = vrot.slane %v24_v1, 7  ;;  %s74_s22 = scalar_lea.vmem %s40_s21, 32  ;;  %p79_p9 = scmp.lt.s32.totalorder %s40_s21, %s40_s21 }
  0x16   :  { %p75_p8 = scmp.ne.s32.totalorder %s40_s21, %s74_s22  ;;  %p80_p10 = scmp.lt.s32.totalorder %s74_s22, %s74_s22 }
  0x17   :  { %v29_v3 = vsel %vm28_vm0, %v27_v2, %v23_v0 }
  0x18   :  { %32 = vst.msk [vmem:[#allocation5] sm:$0x3] %vm31_vm1, %v29_v3  ;;  %p81_p11 = por %p80_p10, %p79_p9 }
  0x1a   :  { %p82_p12 = pnand %p81_p11, %p75_p8 }
  0x1c   :  { %85 = shalt.err (!%p82_p12)
}
  0x1d   :  { %s86_s24 = scalar_lea.hbm %s139_s1, 32 }
  0x1e   :  { %p87_p13 = scmp.ne.s32.totalorder %s139_s1, %s86_s24  ;;  %p90_p0 = scmp.lt.u32.totalorder %s86_s24, %s139_s1 }
  0x20   :  { %p92_p1 = pnand %p90_p0, %p87_p13 }
  0x22   :  { %95 = shalt.err (!%p92_p1)
}
  0x23   :  { %42 = dma.vmem_to_hbm [thread:$0]  %s40_s21, 32, %s139_s1, [#allocation4]  }
  0x24   :  { %98 = dma.done.wait [#allocation4], 32  }
  0x25   :  { %99 = vsyncadd [#allocation4], 4294967264 }
  0x26   :  { %46 = vsyncpa [#allocation3], 1 }
  0x27   :  { %47 = vsyncpa [#allocation4], 1 }

</bundles_post_ra>
